<compile_context>
chip_gen: v5e
topology: v5e:2x2
jax: 0.10.0
libtpu: 0.0.40
codegen_flags: <defaults>
</compile_context>

<pallas_src>
import math
import functools

import jax
import jax.numpy as jnp
from jax.experimental import pallas as pl
from jax.experimental.pallas import tpu as pltpu


# ----------------------------------------------------------------------------
# Kernels
# ----------------------------------------------------------------------------
def _embed_kernel(phone_ref, pitch_ref, mask_ref, w_ref, b_ref, o_ref, *, scale):
    # phone_ref: (BT, 768) bf16, pitch_ref: (BT, H) f32, mask_ref: (BT, 1) f32
    # w_ref: (768, H) bf16, b_ref: (1, H) f32
    x = jnp.dot(phone_ref[...], w_ref[...], preferred_element_type=jnp.float32)
    x = (x + b_ref[...] + pitch_ref[...]) * scale
    x = jnp.where(x >= 0.0, x, 0.1 * x)            # LeakyReLU(0.1)
    o_ref[...] = x * mask_ref[...]                 # Encoder input mask x * x_mask


def _proj_kernel(x_ref, mask_ref, w_ref, b_ref, o_ref):
    # x_ref: (BT, H) f32, w_ref: (H, 2*out_ch) bf16, b_ref: (1, 2*out_ch) f32
    s = jnp.dot(x_ref[...].astype(jnp.bfloat16), w_ref[...],
                preferred_element_type=jnp.float32) + b_ref[...]
    o_ref[...] = s * mask_ref[...]


def _encoder_layer_kernel(lens_ref, x_ref, wqkv_ref, bqkv_ref, rk_ref, rv_ref,
                          wo_ref, bo_ref, g1_ref, be1_ref,
                          w1_ref, b1_ref, w2_ref, b2_ref, g2_ref, be2_ref,
                          o_ref, *, n_heads, head_dim, weff, kernel_size,
                          scale, eps):
    b = pl.program_id(0)
    T, H = x_ref.shape[1], x_ref.shape[2]
    D = head_dim
    K = kernel_size
    length = lens_ref[b]

    # ---- masks / relative index built in-kernel (no [B,T,T] mask DMA) ----
    row = jax.lax.broadcasted_iota(jnp.int32, (T, T), 0)
    col = jax.lax.broadcasted_iota(jnp.int32, (T, T), 1)
    keep = jnp.logical_and(row < length, col < length)          # [T, T]
    rel_idx = col - row                                         # j - i
    maskf = (jax.lax.broadcasted_iota(jnp.int32, (T, 1), 0) < length
             ).astype(jnp.float32)                              # [T, 1]

    x = x_ref[0]                                                # [T, H] f32
    xb = x.astype(jnp.bfloat16)

    # ---- fused q/k/v projections (1x1 convs) on the MXU ----
    qkv = jnp.dot(xb, wqkv_ref[...],
                  preferred_element_type=jnp.float32) + bqkv_ref[...]   # [T, 3H]

    rk = rk_ref[...]                                            # [2*weff+1, D] bf16
    rv = rv_ref[...].astype(jnp.float32)                        # [2*weff+1, D] f32

    head_outs = []
    for h in range(n_heads):
        q = qkv[:, h * D:(h + 1) * D] * scale                   # q / sqrt(D)
        k = qkv[:, H + h * D:H + (h + 1) * D]
        v = qkv[:, 2 * H + h * D:2 * H + (h + 1) * D]
        qb = q.astype(jnp.bfloat16)
        kb = k.astype(jnp.bfloat16)
        vb = v.astype(jnp.bfloat16)

        # content scores
        scores = jax.lax.dot_general(
            qb, kb, dimension_numbers=(((1,), (1,)), ((), ())),
            preferred_element_type=jnp.float32)                 # [T, T]

        # relative-position key bias (skew trick):
        #   rel_logits = q_scaled @ rel_k^T -> [T, 2*weff+1]  (MXU)
        #   scores[i, j] += rel_logits[i, (j - i) + weff]   for |j - i| <= weff
        rel_logits = jax.lax.dot_general(
            qb, rk, dimension_numbers=(((1,), (1,)), ((), ())),
            preferred_element_type=jnp.float32)                 # [T, 2*weff+1]
        for r in range(-weff, weff + 1):
            colv = rel_logits[:, weff + r:weff + r + 1]         # [T, 1]
            scores = scores + jnp.where(rel_idx == r, colv, 0.0)

        scores = jnp.where(keep, scores, -1e4)                  # masked_fill
        p = jax.nn.softmax(scores, axis=-1)                     # f32 [T, T]

        out = jnp.dot(p.astype(jnp.bfloat16), vb,
                      preferred_element_type=jnp.float32)       # [T, D]

        # relative-position value contribution (inverse skew):
        #   out[i] += sum_{|r|<=weff} p[i, i+r] * rel_v[weff + r]
        for r in range(-weff, weff + 1):
            pdiag = jnp.sum(jnp.where(rel_idx == r, p, 0.0),
                            axis=-1, keepdims=True)             # [T, 1]
            out = out + pdiag * rv[weff + r:weff + r + 1, :]
        head_outs.append(out)

    attn = jnp.concatenate(head_outs, axis=-1)                  # [T, H] lane-dense
    y = jnp.dot(attn.astype(jnp.bfloat16), wo_ref[...],
                preferred_element_type=jnp.float32) + bo_ref[...]

    # ---- residual + LayerNorm 1 (f32 stats) ----
    z = x + y
    mu = jnp.mean(z, axis=-1, keepdims=True)
    c = z - mu
    var = jnp.mean(c * c, axis=-1, keepdims=True)
    x1 = c * jax.lax.rsqrt(var + eps) * g1_ref[...] + be1_ref[...]

    # ---- FFN: masked "same" conv1d -> ReLU -> masked conv1d -> mask ----
    pad_l = (K - 1) // 2
    pad_r = K // 2

    def im2col(t, width):
        pieces = []
        if pad_l:
            pieces.append(jnp.zeros((pad_l, width), jnp.float32))
        pieces.append(t)
        if pad_r:
            pieces.append(jnp.zeros((pad_r, width), jnp.float32))
        padded = jnp.concatenate(pieces, axis=0)                # [T + K - 1, width]
        return jnp.concatenate([padded[tap:tap + T] for tap in range(K)],
                               axis=-1)                         # [T, K*width]

    xm = x1 * maskf
    F_ = w1_ref.shape[1]
    h1 = jnp.dot(im2col(xm, H).astype(jnp.bfloat16), w1_ref[...],
                 preferred_element_type=jnp.float32) + b1_ref[...]
    h1 = jnp.maximum(h1, 0.0) * maskf
    y2 = jnp.dot(im2col(h1, F_).astype(jnp.bfloat16), w2_ref[...],
                 preferred_element_type=jnp.float32) + b2_ref[...]
    y2 = y2 * maskf

    # ---- residual + LayerNorm 2 ----
    z2 = x1 + y2
    mu2 = jnp.mean(z2, axis=-1, keepdims=True)
    c2 = z2 - mu2
    var2 = jnp.mean(c2 * c2, axis=-1, keepdims=True)
    o_ref[0] = c2 * jax.lax.rsqrt(var2 + eps) * g2_ref[...] + be2_ref[...]


# ----------------------------------------------------------------------------
# Pallas wrappers
# ----------------------------------------------------------------------------
def run_embed(phone_bt, pitch_emb_bt, mask_bt1, w, b, hidden):
    BT, P = phone_bt.shape
    H = hidden
    kern = functools.partial(_embed_kernel, scale=math.sqrt(H))
    return pl.pallas_call(
        kern,
        out_shape=jax.ShapeDtypeStruct((BT, H), jnp.float32),
        grid=(1,),
        in_specs=[pl.BlockSpec((BT, P), lambda i: (0, 0)),
                  pl.BlockSpec((BT, H), lambda i: (0, 0)),
                  pl.BlockSpec((BT, 1), lambda i: (0, 0)),
                  pl.BlockSpec((P, H), lambda i: (0, 0)),
                  pl.BlockSpec((1, H), lambda i: (0, 0))],
        out_specs=pl.BlockSpec((BT, H), lambda i: (0, 0)),
    )(phone_bt, pitch_emb_bt, mask_bt1, w, b)


def run_proj(x_bt, mask_bt1, w, b):
    BT, H = x_bt.shape
    C2 = w.shape[1]
    return pl.pallas_call(
        _proj_kernel,
        out_shape=jax.ShapeDtypeStruct((BT, C2), jnp.float32),
        grid=(1,),
        in_specs=[pl.BlockSpec((BT, H), lambda i: (0, 0)),
                  pl.BlockSpec((BT, 1), lambda i: (0, 0)),
                  pl.BlockSpec((H, C2), lambda i: (0, 0)),
                  pl.BlockSpec((1, C2), lambda i: (0, 0))],
        out_specs=pl.BlockSpec((BT, C2), lambda i: (0, 0)),
    )(x_bt, mask_bt1, w, b)


def run_encoder_layer(x, lengths, lw, *, n_heads, kernel_size, window_size):
    B, T, H = x.shape
    D = H // n_heads
    W = window_size
    weff = min(W, T - 1)
    rk = lw["rel_k"][W - weff:W + weff + 1]      # [2*weff+1, D] bf16
    rv = lw["rel_v"][W - weff:W + weff + 1]
    K = kernel_size
    F_ = lw["w1"].shape[1]
    R = 2 * weff + 1

    kern = functools.partial(
        _encoder_layer_kernel, n_heads=n_heads, head_dim=D, weff=weff,
        kernel_size=K, scale=1.0 / math.sqrt(D), eps=1e-5)

    grid_spec = pltpu.PrefetchScalarGridSpec(
        num_scalar_prefetch=1,
        grid=(B,),
        in_specs=[
            pl.BlockSpec((1, T, H), lambda b, lens: (b, 0, 0)),     # x
            pl.BlockSpec((H, 3 * H), lambda b, lens: (0, 0)),       # wqkv
            pl.BlockSpec((1, 3 * H), lambda b, lens: (0, 0)),       # bqkv
            pl.BlockSpec((R, D), lambda b, lens: (0, 0)),           # rel_k
            pl.BlockSpec((R, D), lambda b, lens: (0, 0)),           # rel_v
            pl.BlockSpec((H, H), lambda b, lens: (0, 0)),           # wo
            pl.BlockSpec((1, H), lambda b, lens: (0, 0)),           # bo
            pl.BlockSpec((1, H), lambda b, lens: (0, 0)),           # ln1_g
            pl.BlockSpec((1, H), lambda b, lens: (0, 0)),           # ln1_b
            pl.BlockSpec((K * H, F_), lambda b, lens: (0, 0)),      # w1 (im2col)
            pl.BlockSpec((1, F_), lambda b, lens: (0, 0)),          # b1
            pl.BlockSpec((K * F_, H), lambda b, lens: (0, 0)),      # w2 (im2col)
            pl.BlockSpec((1, H), lambda b, lens: (0, 0)),           # b2
            pl.BlockSpec((1, H), lambda b, lens: (0, 0)),           # ln2_g
            pl.BlockSpec((1, H), lambda b, lens: (0, 0)),           # ln2_b
        ],
        out_specs=pl.BlockSpec((1, T, H), lambda b, lens: (b, 0, 0)),
    )
    return pl.pallas_call(
        kern,
        out_shape=jax.ShapeDtypeStruct((B, T, H), jnp.float32),
        grid_spec=grid_spec,
        compiler_params=pltpu.CompilerParams(
            dimension_semantics=("parallel",)),
    )(lengths, x, lw["wqkv"], lw["bqkv"], rk, rv, lw["wo"], lw["bo"],
      lw["ln1_g"], lw["ln1_b"], lw["w1"], lw["b1"], lw["w2"], lw["b2"],
      lw["ln2_g"], lw["ln2_b"])


# ----------------------------------------------------------------------------
# Parameters (random, PyTorch-layout-equivalent) + weight packing
# ----------------------------------------------------------------------------
def make_params(key, hidden, filter_ch, n_heads, n_layers, kernel_size,
                out_ch, window_size):
    H, F_, K = hidden, filter_ch, kernel_size
    D = H // n_heads
    ks = iter(jax.random.split(key, 8 + n_layers * 16))

    def nrm(shape, scale=0.02):
        return jax.random.normal(next(ks), shape, jnp.float32) * scale

    params = {
        "emb_phone_w": nrm((768, H)),
        "emb_phone_b": nrm((H,)),
        "emb_pitch": nrm((256, H), 0.1),
        "proj_w": nrm((H, 2 * out_ch)),
        "proj_b": nrm((2 * out_ch,)),
        "layers": [],
    }
    rel_std = D ** -0.5
    for _ in range(n_layers):
        params["layers"].append({
            "wq": nrm((H, H)), "bq": nrm((H,)),
            "wk": nrm((H, H)), "bk": nrm((H,)),
            "wv": nrm((H, H)), "bv": nrm((H,)),
            "wo": nrm((H, H)), "bo": nrm((H,)),
            "rel_k": nrm((2 * window_size + 1, D), rel_std),
            "rel_v": nrm((2 * window_size + 1, D), rel_std),
            "ln1_g": jnp.ones((H,), jnp.float32),
            "ln1_b": jnp.zeros((H,), jnp.float32),
            "ffn_w1": nrm((K, H, F_)), "ffn_b1": nrm((F_,)),
            "ffn_w2": nrm((K, F_, H)), "ffn_b2": nrm((H,)),
            "ln2_g": jnp.ones((H,), jnp.float32),
            "ln2_b": jnp.zeros((H,), jnp.float32),
        })
    return params


def pack_params(params):
    """Pack / cast weights once: bf16 matmul weights, fused QKV, im2col conv."""
    H = params["emb_phone_w"].shape[1]
    packed = {
        "emb_phone_w": params["emb_phone_w"].astype(jnp.bfloat16),
        "emb_phone_b": params["emb_phone_b"].reshape(1, -1),
        "emb_pitch": params["emb_pitch"],
        "proj_w": params["proj_w"].astype(jnp.bfloat16),
        "proj_b": params["proj_b"].reshape(1, -1),
        "layers": [],
    }
    for lp in params["layers"]:
        K, _, F_ = lp["ffn_w1"].shape
        packed["layers"].append({
            "wqkv": jnp.concatenate([lp["wq"], lp["wk"], lp["wv"]],
                                    axis=1).astype(jnp.bfloat16),
            "bqkv": jnp.concatenate([lp["bq"], lp["bk"], lp["bv"]]).reshape(1, -1),
            "rel_k": lp["rel_k"].astype(jnp.bfloat16),
            "rel_v": lp["rel_v"].astype(jnp.bfloat16),
            "wo": lp["wo"].astype(jnp.bfloat16),
            "bo": lp["bo"].reshape(1, -1),
            "ln1_g": lp["ln1_g"].reshape(1, -1),
            "ln1_b": lp["ln1_b"].reshape(1, -1),
            "w1": lp["ffn_w1"].reshape(K * H, F_).astype(jnp.bfloat16),
            "b1": lp["ffn_b1"].reshape(1, -1),
            "w2": lp["ffn_w2"].reshape(K * F_, H).astype(jnp.bfloat16),
            "b2": lp["ffn_b2"].reshape(1, -1),
            "ln2_g": lp["ln2_g"].reshape(1, -1),
            "ln2_b": lp["ln2_b"].reshape(1, -1),
        })
    return packed


# ----------------------------------------------------------------------------
# Forward (Pallas path)
# ----------------------------------------------------------------------------
def text_encoder_forward(pp, phone, pitch, lengths, *, hidden, n_heads,
                         kernel_size, out_ch, window_size):
    B, T, P = phone.shape
    H = hidden

    x_mask = (jnp.arange(T)[None, :] < lengths[:, None]).astype(jnp.float32)
    mask_bt1 = x_mask.reshape(B * T, 1)

    # emb_phone + emb_pitch, * sqrt(H), LeakyReLU(0.1), * x_mask  (B*T folded)
    pitch_emb = pp["emb_pitch"][pitch].reshape(B * T, H)
    x = run_embed(phone.reshape(B * T, P).astype(jnp.bfloat16), pitch_emb,
                  mask_bt1, pp["emb_phone_w"], pp["emb_phone_b"], H)
    x = x.reshape(B, T, H)

    # fused encoder layers
    for lw in pp["layers"]:
        x = run_encoder_layer(x, lengths, lw, n_heads=n_heads,
                              kernel_size=kernel_size, window_size=window_size)

    # proj is a pointwise 1x1 conv, so the trailing x*x_mask is absorbed by
    # masking stats (identical result); keep m/logs concatenated (lane-dense).
    stats = run_proj(x.reshape(B * T, H), mask_bt1, pp["proj_w"], pp["proj_b"])
    stats = stats.reshape(B, T, 2 * out_ch)
    m = stats[..., :out_ch].transpose(0, 2, 1)
    logs = stats[..., out_ch:].transpose(0, 2, 1)
    return m, logs, x_mask[:, None, :]


# ----------------------------------------------------------------------------
# Pure-JAX f32 reference (faithful port of the PyTorch module) for validation
# ----------------------------------------------------------------------------
def _layer_norm_ref(z, g, b, eps=1e-5):
    mu = jnp.mean(z, axis=-1, keepdims=True)
    c = z - mu
    var = jnp.mean(c * c, axis=-1, keepdims=True)
    return c * jax.lax.rsqrt(var + eps) * g + b


def build_rel_abs(emb_rel, T, window_size):
    pad_len = max(T - (window_size + 1), 0)
    start = max((window_size + 1) - T, 0)
    padded = jnp.pad(emb_rel, ((pad_len, pad_len), (0, 0)))
    used = padded[start:start + 2 * T - 1]
    idx = jnp.arange(T)[None, :] - jnp.arange(T)[:, None] + (T - 1)
    return used[idx]          # [T, T, D]: emb(j - i), zero outside window


def reference_forward(params, phone, pitch, lengths, *, hidden, n_heads,
                      kernel_size, out_ch, window_size):
    B, T, _ = phone.shape
    H = hidden
    D = H // n_heads
    K = kernel_size
    pad_l, pad_r = (K - 1) // 2, K // 2

    x = phone @ params["emb_phone_w"] + params["emb_phone_b"]
    x = x + params["emb_pitch"][pitch]
    x = x * math.sqrt(H)
    x = jnp.where(x >= 0.0, x, 0.1 * x)

    x_mask = (jnp.arange(T)[None, :] < lengths[:, None]).astype(jnp.float32)
    m1 = x_mask[:, :, None]
    keep = m1 * x_mask[:, None, :]
    x = x * m1

    for lp in params["layers"]:
        rk_abs = build_rel_abs(lp["rel_k"], T, window_size)
        rv_abs = build_rel_abs(lp["rel_v"], T, window_size)
        q = x @ lp["wq"] + lp["bq"]
        k = x @ lp["wk"] + lp["bk"]
        v = x @ lp["wv"] + lp["bv"]

        def heads(t):
            return t.reshape(B, T, n_heads, D).transpose(0, 2, 1, 3)

        qh = heads(q) / math.sqrt(D)
        kh, vh = heads(k), heads(v)
        scores = jnp.einsum("bhid,bhjd->bhij", qh, kh)
        scores = scores + jnp.einsum("bhid,ijd->bhij", qh, rk_abs)
        scores = jnp.where(keep[:, None, :, :] > 0.5, scores, -1e4)
        p = jax.nn.softmax(scores, axis=-1)
        out = jnp.einsum("bhij,bhjd->bhid", p, vh)
        out = out + jnp.einsum("bhij,ijd->bhid", p, rv_abs)
        attn = out.transpose(0, 2, 1, 3).reshape(B, T, H)
        y = attn @ lp["wo"] + lp["bo"]
        x = _layer_norm_ref(x + y, lp["ln1_g"], lp["ln1_b"])

        xm = x * m1
        xp = jnp.pad(xm, ((0, 0), (pad_l, pad_r), (0, 0)))
        h = jnp.zeros((B, T, lp["ffn_w1"].shape[2]), jnp.float32) + lp["ffn_b1"]
        for tap in range(K):
            h = h + xp[:, tap:tap + T] @ lp["ffn_w1"][tap]
        h = jnp.maximum(h, 0.0) * m1
        hp = jnp.pad(h, ((0, 0), (pad_l, pad_r), (0, 0)))
        y2 = jnp.zeros((B, T, H), jnp.float32) + lp["ffn_b2"]
        for tap in range(K):
            y2 = y2 + hp[:, tap:tap + T] @ lp["ffn_w2"][tap]
        y2 = y2 * m1
        x = _layer_norm_ref(x + y2, lp["ln2_g"], lp["ln2_b"])

    x = x * m1
    stats = (x @ params["proj_w"] + params["proj_b"]) * m1
    m = stats[..., :out_ch].transpose(0, 2, 1)
    logs = stats[..., out_ch:].transpose(0, 2, 1)
    return m, logs, x_mask[:, None, :]


# ----------------------------------------------------------------------------
if __name__ == "__main__":
    # small-shape config consistent with the module
    B, T = 2, 16
    hidden, filter_ch = 64, 96
    n_heads, n_layers, kernel_size = 2, 2, 3
    out_ch = 32
    window_size = 10            # RVC attentions.Encoder default

    key = jax.random.PRNGKey(0)
    kparam, kphone, kpitch = jax.random.split(key, 3)
    params = make_params(kparam, hidden, filter_ch, n_heads, n_layers,
                         kernel_size, out_ch, window_size)
    packed = pack_params(params)

    phone = jax.random.normal(kphone, (B, T, 768), jnp.float32)
    pitch = jax.random.randint(kpitch, (B, T), 0, 256, dtype=jnp.int32)
    lengths = jnp.array([T, 11], dtype=jnp.int32)

    m, logs, x_mask = text_encoder_forward(
        packed, phone, pitch, lengths, hidden=hidden, n_heads=n_heads,
        kernel_size=kernel_size, out_ch=out_ch, window_size=window_size)
    jax.block_until_ready((m, logs, x_mask))

    assert m.shape == (B, out_ch, T) and logs.shape == (B, out_ch, T)
    assert x_mask.shape == (B, 1, T)
    assert bool(jnp.all(jnp.isfinite(m))) and bool(jnp.all(jnp.isfinite(logs)))

    # numerical sanity check vs. a pure-JAX f32 port of the PyTorch module
    # (kernel uses bf16 MXU inputs -> compare with a loose tolerance)
    with jax.default_matmul_precision("float32"):
        m_ref, logs_ref, mask_ref = reference_forward(
            params, phone, pitch, lengths, hidden=hidden, n_heads=n_heads,
            kernel_size=kernel_size, out_ch=out_ch, window_size=window_size)
    err_m = float(jnp.max(jnp.abs(m - m_ref)))
    err_l = float(jnp.max(jnp.abs(logs - logs_ref)))
    assert err_m < 5e-2 and err_l < 5e-2, (err_m, err_l)
    assert bool(jnp.all(x_mask == mask_ref))

    print("KERNEL_OK")
</pallas_src>

<mosaic_0001>
module attributes {stable_mosaic.version = 11 : i64} {
  func.func @_embed_kernel(%arg0: i32, %arg1: memref<32x768xbf16, #tpu.memory_space<vmem>>, %arg2: memref<32x64xf32, #tpu.memory_space<vmem>>, %arg3: memref<32x1xf32, #tpu.memory_space<vmem>>, %arg4: memref<768x64xbf16, #tpu.memory_space<vmem>>, %arg5: memref<1x64xf32, #tpu.memory_space<vmem>>, %arg6: memref<32x64xf32, #tpu.memory_space<vmem>>) attributes {dimension_semantics = [#tpu.dimension_semantics<arbitrary>], iteration_bounds = array<i64: 1>, scalar_prefetch = 0 : i64, scratch_operands = 0 : i64, tpu.core_type = #tpu.core_type<tc>, window_params = [{pipeline_mode = #tpu.pipeline_mode<synchronous>, transform_indices = @transform_0, window_bounds = array<i64: 32, 768>}, {pipeline_mode = #tpu.pipeline_mode<synchronous>, transform_indices = @transform_1, window_bounds = array<i64: 32, 64>}, {pipeline_mode = #tpu.pipeline_mode<synchronous>, transform_indices = @transform_2, window_bounds = array<i64: 32, 1>}, {pipeline_mode = #tpu.pipeline_mode<synchronous>, transform_indices = @transform_3, window_bounds = array<i64: 768, 64>}, {pipeline_mode = #tpu.pipeline_mode<synchronous>, transform_indices = @transform_4, window_bounds = array<i64: 1, 64>}, {pipeline_mode = #tpu.pipeline_mode<synchronous>, transform_indices = @transform_5, window_bounds = array<i64: 32, 64>}]} {
    %c0 = arith.constant 0 : index
    %c0_0 = arith.constant 0 : index
    %0 = vector.load %arg1[%c0, %c0_0] : memref<32x768xbf16, #tpu.memory_space<vmem>>, vector<32x768xbf16>
    %c0_1 = arith.constant 0 : index
    %c0_2 = arith.constant 0 : index
    %1 = vector.load %arg4[%c0_1, %c0_2] : memref<768x64xbf16, #tpu.memory_space<vmem>>, vector<768x64xbf16>
    %cst = arith.constant dense<0.000000e+00> : vector<32x64xf32>
    %2 = tpu.matmul %0, %1, %cst {dimension_numbers = #tpu.dot_dimension_numbers<[1], [0], [0], [1], [0, 0, 1, 1], [], []>} : vector<32x768xbf16>, vector<768x64xbf16>, vector<32x64xf32> -> vector<32x64xf32>
    %c0_3 = arith.constant 0 : index
    %c0_4 = arith.constant 0 : index
    %3 = vector.load %arg5[%c0_3, %c0_4] : memref<1x64xf32, #tpu.memory_space<vmem>>, vector<1x64xf32>
    %4 = vector.broadcast %3 : vector<1x64xf32> to vector<32x64xf32>
    %5 = arith.addf %2, %4 : vector<32x64xf32>
    %c0_5 = arith.constant 0 : index
    %c0_6 = arith.constant 0 : index
    %6 = vector.load %arg2[%c0_5, %c0_6] : memref<32x64xf32, #tpu.memory_space<vmem>>, vector<32x64xf32>
    %7 = arith.addf %5, %6 : vector<32x64xf32>
    %cst_7 = arith.constant 8.000000e+00 : f32
    %8 = vector.broadcast %cst_7 : f32 to vector<32x64xf32>
    %9 = arith.mulf %7, %8 : vector<32x64xf32>
    %cst_8 = arith.constant 0.000000e+00 : f32
    %10 = vector.broadcast %cst_8 : f32 to vector<32x64xf32>
    %11 = arith.cmpf oge, %9, %10 : vector<32x64xf32>
    %cst_9 = arith.constant 1.000000e-01 : f32
    %12 = vector.broadcast %cst_9 : f32 to vector<32x64xf32>
    %13 = arith.mulf %12, %9 : vector<32x64xf32>
    %14 = arith.select %11, %9, %13 : vector<32x64xi1>, vector<32x64xf32>
    %c0_10 = arith.constant 0 : index
    %c0_11 = arith.constant 0 : index
    %15 = vector.load %arg3[%c0_10, %c0_11] : memref<32x1xf32, #tpu.memory_space<vmem>>, vector<32x1xf32>
    %16 = vector.broadcast %15 : vector<32x1xf32> to vector<32x64xf32>
    %17 = arith.mulf %14, %16 : vector<32x64xf32>
    %c0_12 = arith.constant 0 : index
    %c0_13 = arith.constant 0 : index
    %18 = vector.load %arg6[%c0_12, %c0_13] : memref<32x64xf32, #tpu.memory_space<vmem>>, vector<32x64xf32>
    tpu.vector_store %arg6[%c0_12, %c0_13], %17 {strides = array<i32>} : memref<32x64xf32, #tpu.memory_space<vmem>>, vector<32x64xf32>,
    return
  }
  func.func @transform_0(%arg0: i32) -> (i32, i32) {
    %c0_i32 = arith.constant 0 : i32
    %c0_i32_0 = arith.constant 0 : i32
    %c0_i32_1 = arith.constant 0 : i32
    return %c0_i32, %c0_i32_0 : i32, i32
  }
  func.func @transform_1(%arg0: i32) -> (i32, i32) {
    %c0_i32 = arith.constant 0 : i32
    %c0_i32_0 = arith.constant 0 : i32
    %c0_i32_1 = arith.constant 0 : i32
    return %c0_i32, %c0_i32_0 : i32, i32
  }
  func.func @transform_2(%arg0: i32) -> (i32, i32) {
    %c0_i32 = arith.constant 0 : i32
    %c0_i32_0 = arith.constant 0 : i32
    %c0_i32_1 = arith.constant 0 : i32
    return %c0_i32, %c0_i32_0 : i32, i32
  }
  func.func @transform_3(%arg0: i32) -> (i32, i32) {
    %c0_i32 = arith.constant 0 : i32
    %c0_i32_0 = arith.constant 0 : i32
    %c0_i32_1 = arith.constant 0 : i32
    return %c0_i32, %c0_i32_0 : i32, i32
  }
  func.func @transform_4(%arg0: i32) -> (i32, i32) {
    %c0_i32 = arith.constant 0 : i32
    %c0_i32_0 = arith.constant 0 : i32
    %c0_i32_1 = arith.constant 0 : i32
    return %c0_i32, %c0_i32_0 : i32, i32
  }
  func.func @transform_5(%arg0: i32) -> (i32, i32) {
    %c0_i32 = arith.constant 0 : i32
    %c0_i32_0 = arith.constant 0 : i32
    %c0_i32_1 = arith.constant 0 : i32
    return %c0_i32, %c0_i32_0 : i32, i32
  }
}

</mosaic_0001>

<bundles_post_ra>
// kernel: tpu_custom_call.1
= control target key start
LH: loop header
LB: loop body
LE: loop exit
PB: predicated region body
PF: predicated region fallthrough
CT: control target
= control target key end

     0   :  { %s1303_s0 = inlined_call_operand.vmem [shape: bf16[32,768], index: 0, kind: input, shape index: {}]   ;;  %s1304_s1 = inlined_call_operand.vmem [shape: f32[32,64], index: 1, kind: input, shape index: {}]   ;;  %s1305_s2 = inlined_call_operand.vmem [shape: f32[32,1], index: 2, kind: input, shape index: {}]   ;;  %s1306_s3 = inlined_call_operand.vmem [shape: bf16[768,64], index: 3, kind: input, shape index: {}]   ;;  %s1307_s4 = inlined_call_operand.vmem [shape: f32[1,64], index: 4, kind: input, shape index: {}]   ;;  %s1308_s5 = inlined_call_operand.hbm [shape: f32[32,64], index: 5, kind: output, shape index: {}]  }
   0x1   :  { %v929_v0 = vld [vmem:[%s1306_s3 + $0x38] sm:$0xff]  ;;  %v928_v4 = vld [vmem:[%s1306_s3 + $0x30] sm:$0xff]  ;;  %v927_v8 = vld [vmem:[%s1306_s3 + $0x28] sm:$0xff] }
   0x2   :  { %v937_v1 = vld [vmem:[%s1306_s3 + $0x78] sm:$0xff]  ;;  %481 = vmatpush.bf16.msra.mxu0 %v929_v0  ;;  %v936_v5 = vld [vmem:[%s1306_s3 + $0x70] sm:$0xff]  ;;  %v935_v9 = vld [vmem:[%s1306_s3 + $0x68] sm:$0xff] }
   0x3   :  { %v945_v2 = vld [vmem:[%s1306_s3 + $0xb8] sm:$0xff]  ;;  %500 = vmatpush.bf16.msra.mxu1 %v937_v1  ;;  %v944_v6 = vld [vmem:[%s1306_s3 + $0xb0] sm:$0xff]  ;;  %v943_v10 = vld [vmem:[%s1306_s3 + $0xa8] sm:$0xff] }
   0x4   :  { %v953_v3 = vld [vmem:[%s1306_s3 + $0xf8] sm:$0xff]  ;;  %519 = vmatpush.bf16.msra.mxu2 %v945_v2  ;;  %v952_v7 = vld [vmem:[%s1306_s3 + $0xf0] sm:$0xff]  ;;  %v951_v11 = vld [vmem:[%s1306_s3 + $0xe8] sm:$0xff] }
   0x5   :  { %538 = vmatpush.bf16.msra.mxu3 %v953_v3  ;;  %v926_v12 = vld [vmem:[%s1306_s3 + $0x20] sm:$0xff]  ;;  %v925_v16 = vld [vmem:[%s1306_s3 + $0x18] sm:$0xff]  ;;  %v924_v20 = vld [vmem:[%s1306_s3 + $0x10] sm:$0xff] }
   0x6   :  { %482 = vmatpush.bf16.msra.mxu0 %v928_v4  ;;  %v934_v13 = vld [vmem:[%s1306_s3 + $0x60] sm:$0xff]  ;;  %v933_v17 = vld [vmem:[%s1306_s3 + $0x58] sm:$0xff]  ;;  %v932_v21 = vld [vmem:[%s1306_s3 + $0x50] sm:$0xff] }
   0x7   :  { %501 = vmatpush.bf16.msra.mxu1 %v936_v5  ;;  %v942_v14 = vld [vmem:[%s1306_s3 + $0xa0] sm:$0xff]  ;;  %v941_v18 = vld [vmem:[%s1306_s3 + $0x98] sm:$0xff]  ;;  %v940_v22 = vld [vmem:[%s1306_s3 + $0x90] sm:$0xff] }
   0x8   :  { %520 = vmatpush.bf16.msra.mxu2 %v944_v6  ;;  %v950_v15 = vld [vmem:[%s1306_s3 + $0xe0] sm:$0xff]  ;;  %v949_v19 = vld [vmem:[%s1306_s3 + $0xd8] sm:$0xff]  ;;  %v948_v23 = vld [vmem:[%s1306_s3 + $0xd0] sm:$0xff] }
   0x9   :  { %539 = vmatpush.bf16.msra.mxu3 %v952_v7 }
   0xa   :  { %483 = vmatpush.bf16.msra.mxu0 %v927_v8 }
   0xb   :  { %502 = vmatpush.bf16.msra.mxu1 %v935_v9 }
   0xc   :  { %521 = vmatpush.bf16.msra.mxu2 %v943_v10 }
   0xd   :  { %540 = vmatpush.bf16.msra.mxu3 %v951_v11 }
   0xe   :  { %484 = vmatpush.bf16.msra.mxu0 %v926_v12 }
   0xf   :  { %503 = vmatpush.bf16.msra.mxu1 %v934_v13 }
  0x10   :  { %522 = vmatpush.bf16.msra.mxu2 %v942_v14 }
  0x11   :  { %541 = vmatpush.bf16.msra.mxu3 %v950_v15 }
  0x12   :  { %485 = vmatpush.bf16.msra.mxu0 %v925_v16 }
  0x13   :  { %504 = vmatpush.bf16.msra.mxu1 %v933_v17 }
  0x14   :  { %523 = vmatpush.bf16.msra.mxu2 %v941_v18 }
  0x15   :  { %542 = vmatpush.bf16.msra.mxu3 %v949_v19 }
  0x16   :  { %10 = vsyncpa [#allocation3], 0  ;;  %486 = vmatpush.bf16.msra.mxu0 %v924_v20  ;;  %v923_v24 = vld [vmem:[%s1306_s3 + $0x8] sm:$0xff]  ;;  %v922_v28 = vld [vmem:[%s1306_s3] sm:$0xff]  ;;  %v1019_v51 = vmov 0   ;;  %vm647_vm1 = vcmask 523264  }
  0x17   :  { %505 = vmatpush.bf16.msra.mxu1 %v932_v21  ;;  %v931_v25 = vld [vmem:[%s1306_s3 + $0x48] sm:$0xff]  ;;  %v930_v29 = vld [vmem:[%s1306_s3 + $0x40] sm:$0xff]  ;;  %v913_v33 = vld [vmem:[%s1303_s0 + $0x14] sm:$0xf0]  ;;  %991 = vset.pattern.permute.xlu1 %v1019_v51  ;;  %s1020_s25 = smov [#allocation2]   ;;  %s1021_s29 = smov 128  }
  0x18   :  { %524 = vmatpush.bf16.msra.mxu2 %v940_v22  ;;  %v939_v26 = vld [vmem:[%s1306_s3 + $0x88] sm:$0xff]  ;;  %v938_v30 = vld [vmem:[%s1306_s3 + $0x80] sm:$0xff]  ;;  %v674_v35 = vld [vmem:[%s1303_s0 + $0x18] sm:$0xf0]  ;;  %990 = vset.pattern.permute.xlu0 %v1019_v51  ;;  %s656_s26 = sshll.u32 %s1020_s25, 4  ;;  %s1022_s30 = smov 8   ;;  %s657_s26 = int_to_ptr.vmem [resolvable:$true] %s656_s26 }
  0x19   :  { %543 = vmatpush.bf16.msra.mxu3 %v948_v23  ;;  %v947_v27 = vld [vmem:[%s1306_s3 + $0xc8] sm:$0xff]  ;;  %v946_v31 = vld [vmem:[%s1306_s3 + $0xc0] sm:$0xff]  ;;  %v961_v40 = vld [vmem:[%s1306_s3 + $0x138] sm:$0xff] }
  0x1a   :  { %v672_v32 = vld [vmem:[%s1303_s0] sm:$0xf]  ;;  %487 = vmatpush.bf16.msra.mxu0 %v923_v24  ;;  %v910_v34 = vld [vmem:[%s1303_s0 + $0x4] sm:$0xf]  ;;  %v680_v36 = vld [vmem:[%s1303_s0 + $0x8] sm:$0xf] }
  0x1b   :  { %506 = vmatpush.bf16.msra.mxu1 %v931_v25  ;;  %v914_v37 = vld [vmem:[%s1303_s0 + $0x1c] sm:$0xf0]  ;;  %v911_v38 = vld [vmem:[%s1303_s0 + $0xc] sm:$0xf]  ;;  %v682_v39 = vld [vmem:[%s1303_s0 + $0x20] sm:$0xf0]  ;;  %v673_v41 = vor.u32 %v913_v33, %v672_v32  ;;  %v677_v42 = vor.u32 %v910_v34, %v674_v35 }
  0x1c   :  { %525 = vmatpush.bf16.msra.mxu2 %v939_v26  ;;  %v681_v43 = vor.u32 %v914_v37, %v680_v36  ;;  %v685_v44 = vor.u32 %v911_v38, %v682_v39  ;;  %v969_v45 = vld [vmem:[%s1306_s3 + $0x178] sm:$0xff]  ;;  %v960_v46 = vld [vmem:[%s1306_s3 + $0x130] sm:$0xff]  ;;  %v619_v49 = vld [vmem:[%s1305_s2] sm:$0xff] }
  0x1d   :  { %544 = vmatpush.bf16.msra.mxu3 %v947_v27  ;;  %v968_v47 = vld [vmem:[%s1306_s3 + $0x170] sm:$0xff]  ;;  %v959_v50 = vld [vmem:[%s1306_s3 + $0x128] sm:$0xff]  ;;  %625 = vperm.xlu0 %990, %v619_v49   ;;  %v958_v53 = vld [vmem:[%s1306_s3 + $0x120] sm:$0xff] }
  0x1e   :  { %488 = vmatpush.bf16.msra.mxu0 %v922_v28  ;;  %v621_v48 = vld [vmem:[%s1305_s2 + $0x10] sm:$0xff]  ;;  %v967_v52 = vld [vmem:[%s1306_s3 + $0x168] sm:$0xff]  ;;  %v966_v55 = vld [vmem:[%s1306_s3 + $0x160] sm:$0xff] }
  0x1f   :  { %507 = vmatpush.bf16.msra.mxu1 %v930_v29  ;;  %635 = vperm.xlu1 %991, %v621_v48   ;;  %v696_v54 = vld [vmem:[%s1303_s0 + $0x30] sm:$0xf]  ;;  %v919_v56 = vld [vmem:[%s1303_s0 + $0x44] sm:$0xf0]  ;;  %v916_v57 = vld [vmem:[%s1303_s0 + $0x34] sm:$0xf] }
  0x20   :  { %526 = vmatpush.bf16.msra.mxu2 %v938_v30  ;;  %v698_v58 = vld [vmem:[%s1303_s0 + $0x48] sm:$0xf0]  ;;  %v704_v59 = vld [vmem:[%s1303_s0 + $0x38] sm:$0xf]  ;;  %v920_v60 = vld [vmem:[%s1303_s0 + $0x4c] sm:$0xf0]  ;;  %v697_v2 = vor.u32 %v919_v56, %v696_v54 }
  0x21   :  { %545 = vmatpush.bf16.msra.mxu3 %v946_v31  ;;  %489 = vmatmul.bf16.vlgmr.msra.gmra.mxu0 %v673_v41  ;;  %v917_v61 = vld [vmem:[%s1303_s0 + $0x3c] sm:$0xf]  ;;  %v706_v62 = vld [vmem:[%s1303_s0 + $0x50] sm:$0xf0]  ;;  %v620_v0 = vld [vmem:[%s1305_s2 + $0x8] sm:$0xff]  ;;  %v701_v3 = vor.u32 %v916_v57, %v698_v58  ;;  %v705_v4 = vor.u32 %v920_v60, %v704_v59 }
  0x22   :  { %557 = vmatpush.bf16.msrb.mxu0 %v961_v40  ;;  %508 = vmatmul.bf16.vlgmr.msra.gmra.mxu1 %v677_v42  ;;  %v622_v63 = vld [vmem:[%s1305_s2 + $0x18] sm:$0xff]  ;;  %v709_v5 = vor.u32 %v917_v61, %v706_v62  ;;  %v956_v7 = vld [vmem:[%s1306_s3 + $0x110] sm:$0xff]  ;;  %v955_v9 = vld [vmem:[%s1306_s3 + $0x108] sm:$0xff] }
  0x23   :  { %527 = vmatmul.bf16.vlgmr.msra.gmra.mxu2 %v681_v43  ;;  %576 = vmatpush.bf16.msrb.mxu1 %v969_v45  ;;  %v957_v1 = vld [vmem:[%s1306_s3 + $0x118] sm:$0xff]  ;;  %v964_v8 = vld [vmem:[%s1306_s3 + $0x150] sm:$0xff]  ;;  %v963_v10 = vld [vmem:[%s1306_s3 + $0x148] sm:$0xff] }
  0x24   :  { %970 = vmatpush.bf16.msrb.mxu2 %v961_v40  ;;  %546 = vmatmul.bf16.vlgmr.msra.gmra.mxu3 %v685_v44  ;;  %v965_v6 = vld [vmem:[%s1306_s3 + $0x158] sm:$0xff]  ;;  %v954_v11 = vld [vmem:[%s1306_s3 + $0x100] sm:$0xff]  ;;  %v688_v13 = vld [vmem:[%s1303_s0 + $0x10] sm:$0xf] }
  0x25   :  { %978 = vmatpush.bf16.msrb.mxu3 %v969_v45  ;;  %630 = vperm.xlu0 %990, %v620_v0   ;;  %v962_v12 = vld [vmem:[%s1306_s3 + $0x140] sm:$0xff]  ;;  %v915_v14 = vld [vmem:[%s1303_s0 + $0x24] sm:$0xf0]  ;;  %v921_v16 = vld [vmem:[%s1303_s0 + $0x54] sm:$0xf0] }
  0x26   :  { %558 = vmatpush.bf16.msrb.mxu0 %v960_v46  ;;  %v712_v15 = vld [vmem:[%s1303_s0 + $0x40] sm:$0xf]  ;;  %v912_v17 = vld [vmem:[%s1303_s0 + $0x14] sm:$0xf]  ;;  %v690_v18 = vld [vmem:[%s1303_s0 + $0x28] sm:$0xf0]  ;;  %v689_v21 = vor.u32 %v915_v14, %v688_v13 }
  0x27   :  { %577 = vmatpush.bf16.msrb.mxu1 %v968_v47  ;;  %640 = vperm.xlu1 %991, %v622_v63   ;;  %v918_v19 = vld [vmem:[%s1303_s0 + $0x44] sm:$0xf]  ;;  %v714_v20 = vld [vmem:[%s1303_s0 + $0x58] sm:$0xf0]  ;;  %v713_v22 = vor.u32 %v921_v16, %v712_v15  ;;  %v693_v23 = vor.u32 %v912_v17, %v690_v18  ;;  %v992_v31 = vld [vmem:[%s1307_s4] ss:$0 sm:$0xff] }
  0x28   :  { %971 = vmatpush.bf16.msrb.mxu2 %v960_v46  ;;  %v717_v24 = vor.u32 %v918_v19, %v714_v20  ;;  %v595_v54 = vld [vmem:[%s1304_s1] sm:$0xff] }
  0x29   :  { %979 = vmatpush.bf16.msrb.mxu3 %v968_v47 }
  0x2a   :  { %559 = vmatpush.bf16.msrb.mxu0 %v959_v50 }
  0x2b   :  { %578 = vmatpush.bf16.msrb.mxu1 %v967_v52 }
  0x2c   :  { %972 = vmatpush.bf16.msrb.mxu2 %v959_v50 }
  0x2d   :  { %980 = vmatpush.bf16.msrb.mxu3 %v967_v52 }
  0x2e   :  { %560 = vmatpush.bf16.msrb.mxu0 %v958_v53 }
  0x2f   :  { %579 = vmatpush.bf16.msrb.mxu1 %v966_v55 }
  0x30   :  { %973 = vmatpush.bf16.msrb.mxu2 %v958_v53 }
  0x31   :  { %981 = vmatpush.bf16.msrb.mxu3 %v966_v55  ;;  %494 = vmatmul.bf16.gmra.mxu0 %v697_v2 }
  0x32   :  { %561 = vmatpush.bf16.msrb.mxu0 %v957_v1  ;;  %513 = vmatmul.bf16.gmra.mxu1 %v701_v3  ;;  %v597_v3 = vld [vmem:[%s1304_s1 + $0x10] sm:$0xff] }
  0x33   :  { %532 = vmatmul.bf16.gmra.mxu2 %v705_v4  ;;  %580 = vmatpush.bf16.msrb.mxu1 %v965_v6 }
  0x34   :  { %974 = vmatpush.bf16.msrb.mxu2 %v957_v1  ;;  %551 = vmatmul.bf16.gmra.mxu3 %v709_v5 }
  0x35   :  { %982 = vmatpush.bf16.msrb.mxu3 %v965_v6 }
  0x36   :  { %562 = vmatpush.bf16.msrb.mxu0 %v956_v7 }
  0x37   :  { %581 = vmatpush.bf16.msrb.mxu1 %v964_v8 }
  0x38   :  { %975 = vmatpush.bf16.msrb.mxu2 %v956_v7 }
  0x39   :  { %983 = vmatpush.bf16.msrb.mxu3 %v964_v8 }
  0x3a   :  { %563 = vmatpush.bf16.msrb.mxu0 %v955_v9 }
  0x3b   :  { %582 = vmatpush.bf16.msrb.mxu1 %v963_v10 }
  0x3c   :  { %976 = vmatpush.bf16.msrb.mxu2 %v955_v9 }
  0x3d   :  { %984 = vmatpush.bf16.msrb.mxu3 %v963_v10  ;;  %v596_v10 = vld [vmem:[%s1304_s1 + $0x8] sm:$0xff] }
  0x3e   :  { %564 = vmatpush.bf16.msrb.mxu0 %v954_v11 }
  0x3f   :  { %583 = vmatpush.bf16.msrb.mxu1 %v962_v12 }
  0x40   :  { %977 = vmatpush.bf16.msrb.mxu2 %v954_v11 }
  0x41   :  { %985 = vmatpush.bf16.msrb.mxu3 %v962_v12  ;;  %565 = vmatmul.bf16.vlgmr.msrb.gmra.mxu0 %v689_v21 }
  0x42   :  { %584 = vmatmul.bf16.vlgmr.msrb.gmra.mxu1 %v693_v23 }
  0x43   :  { %570 = vmatmul.bf16.vlgmr.msrb.gmra.mxu2 %v713_v22 }
  0x44   :  { %589 = vmatmul.bf16.vlgmr.msrb.gmra.mxu3 %v717_v24  ;;  %v598_v24 = vld [vmem:[%s1304_s1 + $0x18] sm:$0xff]  ;;  %s658_s1 = sshll.u32 %s1308_s5, 4  ;;  %s659_s1 = int_to_ptr.hbm [resolvable:$true] %s658_s1 }
  0x8f   :  { %v626_v5 = vpop.permute.xlu0 %625 }
  0x91   :  { %v636_v20 = vpop.permute.xlu1 %635 }
  0x9e   :  { %v490_v25 = vpop.f32.mrf.mxu0 }
  0x9f   :  { %v509_v26 = vpop.f32.mrf.mxu1  ;;  %v491_v36 = vadd.f32 %v992_v31, %v490_v25 }
  0xa1   :  { %v510_v37 = vadd.f32 %v509_v26, %v491_v36 }
  0xa6   :  { %v528_v27 = vpop.f32.mrf.mxu2  ;;  %v492_v29 = vpop.f32.mrf.mxu0 }
  0xa7   :  { %v547_v28 = vpop.f32.mrf.mxu3  ;;  %v511_v30 = vpop.f32.mrf.mxu1  ;;  %v529_v43 = vadd.f32 %v528_v27, %v510_v37  ;;  %v493_v44 = vadd.f32 %v992_v31, %v492_v29 }
  0xa8   :  { %v631_v29 = vpop.permute.xlu0 %630 }
  0xa9   :  { %v548_v46 = vadd.f32 %v547_v28, %v529_v43  ;;  %v512_v50 = vadd.f32 %v511_v30, %v493_v44 }
  0xae   :  { %v530_v32 = vpop.f32.mrf.mxu2  ;;  %v495_v34 = vpop.f32.mrf.mxu0 }
  0xaf   :  { %v549_v33 = vpop.f32.mrf.mxu3  ;;  %v514_v35 = vpop.f32.mrf.mxu1  ;;  %v496_v42 = vadd.f32 %v992_v31, %v495_v34  ;;  %v531_v55 = vadd.f32 %v530_v32, %v512_v50 }
  0xb1   :  { %v515_v45 = vadd.f32 %v514_v35, %v496_v42  ;;  %v550_v60 = vadd.f32 %v549_v33, %v531_v55  ;;  %v641_v35 = vpop.permute.xlu1 %640 }
  0xb6   :  { %v533_v38 = vpop.f32.mrf.mxu2  ;;  %v497_v40 = vpop.f32.mrf.mxu0 }
  0xb7   :  { %v552_v39 = vpop.f32.mrf.mxu3  ;;  %v516_v41 = vpop.f32.mrf.mxu1  ;;  %v534_v53 = vadd.f32 %v533_v38, %v515_v45  ;;  %v498_v57 = vadd.f32 %v992_v31, %v497_v40 }
  0xb9   :  { %v553_v59 = vadd.f32 %v552_v39, %v534_v53  ;;  %v517_v63 = vadd.f32 %v516_v41, %v498_v57 }
  0xbe   :  { %v535_v47 = vpop.f32.mrf.mxu2  ;;  %v566_v49 = vpop.f32.mrf.mxu0 }
  0xbf   :  { %v554_v48 = vpop.f32.mrf.mxu3  ;;  %v567_v51 = vadd.f32 %v566_v49, %v548_v46  ;;  %v585_v52 = vpop.f32.mrf.mxu1  ;;  %v536_v7 = vadd.f32 %v535_v47, %v517_v63 }
  0xc1   :  { %v586_v56 = vadd.f32 %v585_v52, %v567_v51  ;;  %v555_v16 = vadd.f32 %v554_v48, %v536_v7 }
  0xc3   :  { %v599_v58 = vadd.f32 %v595_v54, %v586_v56 }
  0xc5   :  { %v603_v61 = vmul.f32 8.0, %v599_v58 }
  0xc6   :  { %v571_v62 = vpop.f32.mrf.mxu2  ;;  %v568_v2 = vpop.f32.mrf.mxu0 }
  0xc7   :  { %v572_v0 = vadd.f32 %v571_v62, %v553_v59  ;;  %v590_v1 = vpop.f32.mrf.mxu3  ;;  %v569_v4 = vadd.f32 %v568_v2, %v550_v60  ;;  %vm607_vm0 = vcmp.ge.f32.partialorder %v603_v61, 0.0  ;;  %v611_v6 = vmul.f32 0.1, %v603_v61  ;;  %v587_v9 = vpop.f32.mrf.mxu1 }
  0xc9   :  { %v591_v8 = vadd.f32 %v590_v1, %v572_v0  ;;  %v588_v11 = vadd.f32 %v587_v9, %v569_v4  ;;  %v615_v12 = vsel %vm607_vm0, %v603_v61, %v611_v6 }
  0xca   :  { %v643_v14 = vmul.f32 %v626_v5, %v615_v12 }
  0xcb   :  { %v601_v13 = vadd.f32 %v597_v3, %v591_v8  ;;  %v600_v15 = vadd.f32 %v596_v10, %v588_v11 }
  0xcc   :  { %648 = vst.msk [vmem:[#allocation2] sm:$0xff] %vm647_vm1, %v643_v14 }
  0xcd   :  { %v605_v17 = vmul.f32 8.0, %v601_v13  ;;  %v604_v18 = vmul.f32 8.0, %v600_v15 }
  0xce   :  { %v573_v19 = vpop.f32.mrf.mxu2 }
  0xcf   :  { %vm609_vm2 = vcmp.ge.f32.partialorder %v605_v17, 0.0  ;;  %v613_v21 = vmul.f32 0.1, %v605_v17  ;;  %v574_v22 = vadd.f32 %v573_v19, %v555_v16  ;;  %v592_v23 = vpop.f32.mrf.mxu3  ;;  %vm608_vm3 = vcmp.ge.f32.partialorder %v604_v18, 0.0 }
  0xd0   :  { %v612_v25 = vmul.f32 0.1, %v604_v18 }
  0xd1   :  { %v617_v26 = vsel %vm609_vm2, %v605_v17, %v613_v21  ;;  %v593_v27 = vadd.f32 %v592_v23, %v574_v22 }
  0xd2   :  { %v645_v28 = vmul.f32 %v636_v20, %v617_v26  ;;  %v616_v30 = vsel %vm608_vm3, %v604_v18, %v612_v25 }
  0xd3   :  { %v602_v31 = vadd.f32 %v598_v24, %v593_v27  ;;  %v644_v32 = vmul.f32 %v631_v29, %v616_v30 }
  0xd4   :  { %650 = vst.msk [vmem:[#allocation2 + $0x10] sm:$0xff] %vm647_vm1, %v645_v28 }
  0xd5   :  { %v606_v33 = vmul.f32 8.0, %v602_v31  ;;  %649 = vst.msk [vmem:[#allocation2 + $0x8] sm:$0xff] %vm647_vm1, %v644_v32 }
  0xd7   :  { %vm610_vm4 = vcmp.ge.f32.partialorder %v606_v33, 0.0  ;;  %v614_v34 = vmul.f32 0.1, %v606_v33 }
  0xd9   :  { %v618_v36 = vsel %vm610_vm4, %v606_v33, %v614_v34 }
  0xda   :  { %v646_v37 = vmul.f32 %v641_v35, %v618_v36 }
  0xdc   :  { %651 = vst.msk [vmem:[#allocation2 + $0x18] sm:$0xff] %vm647_vm1, %v646_v37 }
  0xdd   :  { %664 = dma.vmem_to_hbm [thread:$0]  %s657_s26, 512, %s659_s1, [#allocation3], %s1021_s29, %s1021_s29, %s1022_s30  }
  0xde   :  { %1017 = dma.done.wait [#allocation3], 512  }
  0xdf   :  { %1018 = vsyncadd [#allocation3], 4294966784 }
  0xe0   :  { %669 = vsyncpa [#allocation3], 1 }

</bundles_post_ra>
